<compile_context>
chip_gen: v5e
topology: v5e:2x2
jax: 0.10.0
libtpu: 0.0.40
codegen_flags: <defaults>
</compile_context>

<pallas_src>
import functools

import jax
import jax.numpy as jnp
from jax.experimental import pallas as pl
from jax.experimental.pallas import tpu as pltpu


def _lc_attention_kernel(x_ref, wq_ref, wk_ref, wv_ref, wo_ref, bo_ref,
                         seg_ref, segt_ref, o_ref,
                         *, heads, dim_head, seq_len, scale, b_tile):
    inner = heads * dim_head
    n = seq_len
    bt = b_tile

    x = x_ref[...]                                    # (bt, n, dim)  bf16
    x2d = x.reshape(bt * n, x.shape[-1])              # (bt*n, dim)

    # --- K / V projections for every token (MXU, bf16 in / f32 accum) ---
    k = jnp.dot(x2d, wk_ref[...], preferred_element_type=jnp.float32)   # (bt*n, inner)
    v = jnp.dot(x2d, wv_ref[...], preferred_element_type=jnp.float32)   # (bt*n, inner)

    # --- Q projection only for the LAST token of each batch element ---
    x_last = x[:, n - 1, :]                           # (bt, dim)
    q = jnp.dot(x_last, wq_ref[...],
                preferred_element_type=jnp.float32) * scale              # (bt, inner)

    # --- all-head scores, loop-free:
    #     scores[b, j, h] = sum_d q[b, h*dh+d] * k[b, j, h*dh+d]
    k3 = k.reshape(bt, n, inner)
    prod = k3 * q[:, None, :]                         # (bt, n, inner)  VPU
    scores = jnp.dot(prod.reshape(bt * n, inner), seg_ref[...],
                     preferred_element_type=jnp.float32)                 # (bt*n, heads)
    scores = scores.reshape(bt, n, heads)             # one dense tile for all heads

    # --- softmax over keys (axis = tokens), f32 ---
    m = jnp.max(scores, axis=1, keepdims=True)        # (bt, 1, heads)
    p = jnp.exp(scores - m)                           # (bt, n, heads)
    denom = jnp.sum(p, axis=1, keepdims=True)         # (bt, 1, heads)
    attn = p * pl.reciprocal(denom, approx=True)      # (bt, n, heads)

    # --- out[b, h*dh+d] = sum_j attn[b, j, h] * v[b, j, h*dh+d] ---
    attn_full = jnp.dot(attn.reshape(bt * n, heads), segt_ref[...],
                        preferred_element_type=jnp.float32)              # (bt*n, inner)
    out_heads = jnp.sum((attn_full * v).reshape(bt, n, inner), axis=1)   # (bt, inner)

    # --- output projection + bias ---
    o = jnp.dot(out_heads.astype(jnp.bfloat16), wo_ref[...],
                preferred_element_type=jnp.float32) + bo_ref[...]        # (bt, dim)
    o_ref[...] = o.reshape(bt, 1, o.shape[-1]).astype(o_ref.dtype)


def _pick_b_tile(b):
    """Fold several batch elements per grid step to amortize per-step overhead,
    but keep >= 2 grid steps so both v7x TensorCores get work."""
    for bt in (16, 8, 4, 2):
        if b % bt == 0 and b // bt >= 2:
            return bt
    return 1 if b >= 2 else b


def lc_attention(x, w_qkv, w_out, b_out, *, heads, dim_head, b_tile=None):
    """x: (b, n, dim); w_qkv: (3*inner, dim); w_out: (dim, inner); b_out: (dim,).
    Weight layouts follow PyTorch nn.Linear ((out, in)); returns (b, 1, dim)."""
    b, n, dim = x.shape
    inner = heads * dim_head
    scale = dim_head ** -0.5
    out_dtype = x.dtype

    # Pre-transpose to (in, out), cast matmul operands to bf16, and split the
    # fused QKV weight so the kernel never projects Q for unused tokens.
    w_qkv_t = jnp.asarray(w_qkv).T.astype(jnp.bfloat16)      # (dim, 3*inner)
    w_q = w_qkv_t[:, 0 * inner:1 * inner]
    w_k = w_qkv_t[:, 1 * inner:2 * inner]
    w_v = w_qkv_t[:, 2 * inner:3 * inner]
    w_out_t = jnp.asarray(w_out).T.astype(jnp.bfloat16)      # (inner, dim)
    b_out_2d = jnp.asarray(b_out).reshape(1, dim).astype(jnp.float32)
    x_bf = x.astype(jnp.bfloat16)

    # One-hot channel->head "segment" matrices: loop-free per-head reduction
    # (scores) and per-head broadcast (attn -> inner channels) on the MXU.
    head_id = jnp.arange(inner, dtype=jnp.int32) // dim_head
    seg = (head_id[:, None] == jnp.arange(heads, dtype=jnp.int32)[None, :]
           ).astype(jnp.float32)                             # (inner, heads)
    seg_t = seg.T                                            # (heads, inner)

    if b_tile is None:
        b_tile = _pick_b_tile(b)
    assert b % b_tile == 0, "b_tile must divide batch"
    grid = (b // b_tile,)

    kernel = functools.partial(
        _lc_attention_kernel, heads=heads, dim_head=dim_head,
        seq_len=n, scale=scale, b_tile=b_tile)

    return pl.pallas_call(
        kernel,
        out_shape=jax.ShapeDtypeStruct((b, 1, dim), out_dtype),
        grid_spec=pltpu.PrefetchScalarGridSpec(
            num_scalar_prefetch=0,
            grid=grid,
            in_specs=[
                pl.BlockSpec((b_tile, n, dim), lambda i: (i, 0, 0)),   # x tile
                pl.BlockSpec((dim, inner), lambda i: (0, 0)),          # w_q
                pl.BlockSpec((dim, inner), lambda i: (0, 0)),          # w_k
                pl.BlockSpec((dim, inner), lambda i: (0, 0)),          # w_v
                pl.BlockSpec((inner, dim), lambda i: (0, 0)),          # w_out
                pl.BlockSpec((1, dim), lambda i: (0, 0)),              # bias
                pl.BlockSpec((inner, heads), lambda i: (0, 0)),        # seg
                pl.BlockSpec((heads, inner), lambda i: (0, 0)),        # seg^T
            ],
            out_specs=pl.BlockSpec((b_tile, 1, dim), lambda i: (i, 0, 0)),
        ),
        compiler_params=pltpu.CompilerParams(
            dimension_semantics=("parallel",),
            vmem_limit_bytes=48 * 1024 * 1024),
    )(x_bf, w_q, w_k, w_v, w_out_t, b_out_2d, seg, seg_t)


def lc_attention_ref(x, w_qkv, w_out, b_out, *, heads, dim_head,
                     compute_dtype=jnp.float32):
    """Pure-JAX reference mirroring the PyTorch forward (eval mode).
    compute_dtype lets the reference use the same bf16 matmul inputs as the kernel."""
    b, n, dim = x.shape
    inner = heads * dim_head
    scale = dim_head ** -0.5
    xc = jnp.asarray(x).astype(compute_dtype)
    wqkv = jnp.asarray(w_qkv).astype(compute_dtype)
    wout = jnp.asarray(w_out).astype(compute_dtype)
    qkv = jnp.einsum('bnd,od->bno', xc, wqkv,
                     preferred_element_type=jnp.float32)     # (b, n, 3*inner)
    q, k, v = jnp.split(qkv, 3, axis=-1)

    def to_heads(t):
        return t.reshape(b, n, heads, dim_head).transpose(0, 2, 1, 3)
    q, k, v = map(to_heads, (q, k, v))                       # (b, h, n, d)
    q = q[:, :, -1:, :]                                      # (b, h, 1, d)
    dots = jnp.einsum('bhid,bhjd->bhij', q, k) * scale
    attn = jax.nn.softmax(dots, axis=-1)
    out = jnp.einsum('bhij,bhjd->bhid', attn, v)             # (b, h, 1, d)
    out = out.transpose(0, 2, 1, 3).reshape(b, 1, inner)
    return jnp.einsum('bni,oi->bno', out.astype(compute_dtype), wout,
                      preferred_element_type=jnp.float32) + b_out


if __name__ == "__main__":
    # small shapes consistent with the module's forward
    B, N, DIM = 2, 8, 32
    HEADS, DIM_HEAD = 4, 16
    INNER = HEADS * DIM_HEAD

    key = jax.random.PRNGKey(0)
    kx, kq, ko, kb = jax.random.split(key, 4)
    x = jax.random.normal(kx, (B, N, DIM), dtype=jnp.float32)
    # deterministic synthetic parameters (PyTorch Linear layouts: (out, in))
    w_qkv = jax.random.normal(kq, (3 * INNER, DIM), dtype=jnp.float32) * (DIM ** -0.5)
    w_out = jax.random.normal(ko, (DIM, INNER), dtype=jnp.float32) * (INNER ** -0.5)
    b_out = jax.random.normal(kb, (DIM,), dtype=jnp.float32) * 0.01
    # TODO(synk): nn.Dropout in to_out is identity in eval mode and is omitted.

    out = lc_attention(x, w_qkv, w_out, b_out, heads=HEADS, dim_head=DIM_HEAD)
    out = jax.block_until_ready(out)
    assert out.shape == (B, 1, DIM)

    # kernel uses bf16 matmul inputs (f32 accumulation) + approx reciprocal, so
    # compare against a reference that casts its matmul inputs the same way.
    ref = lc_attention_ref(x, w_qkv, w_out, b_out, heads=HEADS,
                           dim_head=DIM_HEAD, compute_dtype=jnp.bfloat16)
    assert jnp.allclose(out, ref, atol=3e-2, rtol=3e-2), "mismatch vs reference"

    print("KERNEL_OK")
</pallas_src>

<mosaic_0001>
module attributes {stable_mosaic.version = 11 : i64} {
  func.func @_lc_attention_kernel(%arg0: i32, %arg1: memref<1x8x32xbf16, #tpu.memory_space<vmem>>, %arg2: memref<32x64xbf16, #tpu.memory_space<vmem>>, %arg3: memref<32x64xbf16, #tpu.memory_space<vmem>>, %arg4: memref<32x64xbf16, #tpu.memory_space<vmem>>, %arg5: memref<64x32xbf16, #tpu.memory_space<vmem>>, %arg6: memref<1x32xf32, #tpu.memory_space<vmem>>, %arg7: memref<64x4xf32, #tpu.memory_space<vmem>>, %arg8: memref<4x64xf32, #tpu.memory_space<vmem>>, %arg9: memref<1x1x32xf32, #tpu.memory_space<vmem>>) attributes {dimension_semantics = [#tpu.dimension_semantics<parallel>], iteration_bounds = array<i64: 2>, scalar_prefetch = 0 : i64, scratch_operands = 0 : i64, tpu.core_type = #tpu.core_type<tc>, window_params = [{transform_indices = @transform_0, window_bounds = array<i64: 1, 8, 32>}, {pipeline_mode = #tpu.pipeline_mode<synchronous>, transform_indices = @transform_1, window_bounds = array<i64: 32, 64>}, {pipeline_mode = #tpu.pipeline_mode<synchronous>, transform_indices = @transform_2, window_bounds = array<i64: 32, 64>}, {pipeline_mode = #tpu.pipeline_mode<synchronous>, transform_indices = @transform_3, window_bounds = array<i64: 32, 64>}, {pipeline_mode = #tpu.pipeline_mode<synchronous>, transform_indices = @transform_4, window_bounds = array<i64: 64, 32>}, {pipeline_mode = #tpu.pipeline_mode<synchronous>, transform_indices = @transform_5, window_bounds = array<i64: 1, 32>}, {pipeline_mode = #tpu.pipeline_mode<synchronous>, transform_indices = @transform_6, window_bounds = array<i64: 64, 4>}, {pipeline_mode = #tpu.pipeline_mode<synchronous>, transform_indices = @transform_7, window_bounds = array<i64: 4, 64>}, {transform_indices = @transform_8, window_bounds = array<i64: 1, 1, 32>}]} {
    %c0 = arith.constant 0 : index
    %c0_0 = arith.constant 0 : index
    %c0_1 = arith.constant 0 : index
    %0 = vector.load %arg1[%c0, %c0_0, %c0_1] : memref<1x8x32xbf16, #tpu.memory_space<vmem>>, vector<1x8x32xbf16>
    %1 = vector.shape_cast %0 : vector<1x8x32xbf16> to vector<8x32xbf16>
    %c0_2 = arith.constant 0 : index
    %c0_3 = arith.constant 0 : index
    %2 = vector.load %arg3[%c0_2, %c0_3] : memref<32x64xbf16, #tpu.memory_space<vmem>>, vector<32x64xbf16>
    %cst = arith.constant dense<0.000000e+00> : vector<8x64xf32>
    %3 = tpu.matmul %1, %2, %cst {dimension_numbers = #tpu.dot_dimension_numbers<[1], [0], [0], [1], [0, 0, 1, 1], [], []>} : vector<8x32xbf16>, vector<32x64xbf16>, vector<8x64xf32> -> vector<8x64xf32>
    %c0_4 = arith.constant 0 : index
    %c0_5 = arith.constant 0 : index
    %4 = vector.load %arg4[%c0_4, %c0_5] : memref<32x64xbf16, #tpu.memory_space<vmem>>, vector<32x64xbf16>
    %cst_6 = arith.constant dense<0.000000e+00> : vector<8x64xf32>
    %5 = tpu.matmul %1, %4, %cst_6 {dimension_numbers = #tpu.dot_dimension_numbers<[1], [0], [0], [1], [0, 0, 1, 1], [], []>} : vector<8x32xbf16>, vector<32x64xbf16>, vector<8x64xf32> -> vector<8x64xf32>
    %6 = vector.extract_strided_slice %0 {offsets = [0, 7, 0], sizes = [1, 1, 32], strides = [1, 1, 1]} : vector<1x8x32xbf16> to vector<1x1x32xbf16>
    %7 = vector.shape_cast %6 : vector<1x1x32xbf16> to vector<1x32xbf16>
    %c0_7 = arith.constant 0 : index
    %c0_8 = arith.constant 0 : index
    %8 = vector.load %arg2[%c0_7, %c0_8] : memref<32x64xbf16, #tpu.memory_space<vmem>>, vector<32x64xbf16>
    %cst_9 = arith.constant dense<0.000000e+00> : vector<1x64xf32>
    %9 = tpu.matmul %7, %8, %cst_9 {dimension_numbers = #tpu.dot_dimension_numbers<[1], [0], [0], [1], [0, 0, 1, 1], [], []>} : vector<1x32xbf16>, vector<32x64xbf16>, vector<1x64xf32> -> vector<1x64xf32>
    %cst_10 = arith.constant 2.500000e-01 : f32
    %10 = vector.broadcast %cst_10 : f32 to vector<1x64xf32>
    %11 = arith.mulf %9, %10 : vector<1x64xf32>
    %12 = vector.shape_cast %3 : vector<8x64xf32> to vector<1x8x64xf32>
    %13 = vector.shape_cast %11 : vector<1x64xf32> to vector<1x1x64xf32>
    %14 = vector.broadcast %13 : vector<1x1x64xf32> to vector<1x8x64xf32>
    %15 = arith.mulf %12, %14 : vector<1x8x64xf32>
    %16 = vector.shape_cast %15 : vector<1x8x64xf32> to vector<8x64xf32>
    %c0_11 = arith.constant 0 : index
    %c0_12 = arith.constant 0 : index
    %17 = vector.load %arg7[%c0_11, %c0_12] : memref<64x4xf32, #tpu.memory_space<vmem>>, vector<64x4xf32>
    %cst_13 = arith.constant dense<0.000000e+00> : vector<8x4xf32>
    %18 = tpu.matmul %16, %17, %cst_13 {dimension_numbers = #tpu.dot_dimension_numbers<[1], [0], [0], [1], [0, 0, 1, 1], [], []>} : vector<8x64xf32>, vector<64x4xf32>, vector<8x4xf32> -> vector<8x4xf32>
    %19 = vector.shape_cast %18 : vector<8x4xf32> to vector<1x8x4xf32>
    %cst_14 = arith.constant dense<0xFF800000> : vector<1x4xf32>
    %20 = vector.multi_reduction <maximumf>, %19, %cst_14 [1] : vector<1x8x4xf32> to vector<1x4xf32>
    %21 = vector.shape_cast %20 : vector<1x4xf32> to vector<1x1x4xf32>
    %22 = vector.broadcast %21 : vector<1x1x4xf32> to vector<1x8x4xf32>
    %23 = arith.subf %19, %22 : vector<1x8x4xf32>
    %24 = math.exp %23 : vector<1x8x4xf32>
    %cst_15 = arith.constant dense<0.000000e+00> : vector<1x4xf32>
    %25 = vector.multi_reduction <add>, %24, %cst_15 [1] : vector<1x8x4xf32> to vector<1x4xf32>
    %26 = vector.shape_cast %25 : vector<1x4xf32> to vector<1x1x4xf32>
    %27 = tpu.reciprocal %26 {approx = true} : vector<1x1x4xf32> -> vector<1x1x4xf32>
    %28 = vector.broadcast %27 : vector<1x1x4xf32> to vector<1x8x4xf32>
    %29 = arith.mulf %24, %28 : vector<1x8x4xf32>
    %30 = vector.shape_cast %29 : vector<1x8x4xf32> to vector<8x4xf32>
    %c0_16 = arith.constant 0 : index
    %c0_17 = arith.constant 0 : index
    %31 = vector.load %arg8[%c0_16, %c0_17] : memref<4x64xf32, #tpu.memory_space<vmem>>, vector<4x64xf32>
    %cst_18 = arith.constant dense<0.000000e+00> : vector<8x64xf32>
    %32 = tpu.matmul %30, %31, %cst_18 {dimension_numbers = #tpu.dot_dimension_numbers<[1], [0], [0], [1], [0, 0, 1, 1], [], []>} : vector<8x4xf32>, vector<4x64xf32>, vector<8x64xf32> -> vector<8x64xf32>
    %33 = arith.mulf %32, %5 : vector<8x64xf32>
    %34 = vector.shape_cast %33 : vector<8x64xf32> to vector<1x8x64xf32>
    %cst_19 = arith.constant dense<0.000000e+00> : vector<1x64xf32>
    %35 = vector.multi_reduction <add>, %34, %cst_19 [1] : vector<1x8x64xf32> to vector<1x64xf32>
    %36 = arith.truncf %35 : vector<1x64xf32> to vector<1x64xbf16>
    %c0_20 = arith.constant 0 : index
    %c0_21 = arith.constant 0 : index
    %37 = vector.load %arg5[%c0_20, %c0_21] : memref<64x32xbf16, #tpu.memory_space<vmem>>, vector<64x32xbf16>
    %cst_22 = arith.constant dense<0.000000e+00> : vector<1x32xf32>
    %38 = tpu.matmul %36, %37, %cst_22 {dimension_numbers = #tpu.dot_dimension_numbers<[1], [0], [0], [1], [0, 0, 1, 1], [], []>} : vector<1x64xbf16>, vector<64x32xbf16>, vector<1x32xf32> -> vector<1x32xf32>
    %c0_23 = arith.constant 0 : index
    %c0_24 = arith.constant 0 : index
    %39 = vector.load %arg6[%c0_23, %c0_24] : memref<1x32xf32, #tpu.memory_space<vmem>>, vector<1x32xf32>
    %40 = arith.addf %38, %39 : vector<1x32xf32>
    %41 = vector.shape_cast %40 : vector<1x32xf32> to vector<1x1x32xf32>
    %c0_25 = arith.constant 0 : index
    %c0_26 = arith.constant 0 : index
    %c0_27 = arith.constant 0 : index
    %42 = vector.load %arg9[%c0_25, %c0_26, %c0_27] : memref<1x1x32xf32, #tpu.memory_space<vmem>>, vector<1x1x32xf32>
    tpu.vector_store %arg9[%c0_25, %c0_26, %c0_27], %41 {strides = array<i32>} : memref<1x1x32xf32, #tpu.memory_space<vmem>>, vector<1x1x32xf32>,
    return
  }
  func.func @transform_0(%arg0: i32) -> (i32, i32, i32) {
    %c0_i32 = arith.constant 0 : i32
    %c0_i32_0 = arith.constant 0 : i32
    %c0_i32_1 = arith.constant 0 : i32
    return %arg0, %c0_i32, %c0_i32_0 : i32, i32, i32
  }
  func.func @transform_1(%arg0: i32) -> (i32, i32) {
    %c0_i32 = arith.constant 0 : i32
    %c0_i32_0 = arith.constant 0 : i32
    %c0_i32_1 = arith.constant 0 : i32
    return %c0_i32, %c0_i32_0 : i32, i32
  }
  func.func @transform_2(%arg0: i32) -> (i32, i32) {
    %c0_i32 = arith.constant 0 : i32
    %c0_i32_0 = arith.constant 0 : i32
    %c0_i32_1 = arith.constant 0 : i32
    return %c0_i32, %c0_i32_0 : i32, i32
  }
  func.func @transform_3(%arg0: i32) -> (i32, i32) {
    %c0_i32 = arith.constant 0 : i32
    %c0_i32_0 = arith.constant 0 : i32
    %c0_i32_1 = arith.constant 0 : i32
    return %c0_i32, %c0_i32_0 : i32, i32
  }
  func.func @transform_4(%arg0: i32) -> (i32, i32) {
    %c0_i32 = arith.constant 0 : i32
    %c0_i32_0 = arith.constant 0 : i32
    %c0_i32_1 = arith.constant 0 : i32
    return %c0_i32, %c0_i32_0 : i32, i32
  }
  func.func @transform_5(%arg0: i32) -> (i32, i32) {
    %c0_i32 = arith.constant 0 : i32
    %c0_i32_0 = arith.constant 0 : i32
    %c0_i32_1 = arith.constant 0 : i32
    return %c0_i32, %c0_i32_0 : i32, i32
  }
  func.func @transform_6(%arg0: i32) -> (i32, i32) {
    %c0_i32 = arith.constant 0 : i32
    %c0_i32_0 = arith.constant 0 : i32
    %c0_i32_1 = arith.constant 0 : i32
    return %c0_i32, %c0_i32_0 : i32, i32
  }
  func.func @transform_7(%arg0: i32) -> (i32, i32) {
    %c0_i32 = arith.constant 0 : i32
    %c0_i32_0 = arith.constant 0 : i32
    %c0_i32_1 = arith.constant 0 : i32
    return %c0_i32, %c0_i32_0 : i32, i32
  }
  func.func @transform_8(%arg0: i32) -> (i32, i32, i32) {
    %c0_i32 = arith.constant 0 : i32
    %c0_i32_0 = arith.constant 0 : i32
    %c0_i32_1 = arith.constant 0 : i32
    return %arg0, %c0_i32, %c0_i32_0 : i32, i32, i32
  }
}

</mosaic_0001>

<bundles_post_ra>
// kernel: tpu_custom_call.1
= control target key start
LH: loop header
LB: loop body
LE: loop exit
PB: predicated region body
PF: predicated region fallthrough
CT: control target
= control target key end

     0   :  { %13 = vsyncpa [#allocation3], 0  ;;  %s984_s0 = inlined_call_operand.vmem [shape: bf16[2,8,32], index: 0, kind: input, shape index: {}]   ;;  %s985_s1 = inlined_call_operand.vmem [shape: bf16[32,64], index: 1, kind: input, shape index: {}]   ;;  %s986_s2 = inlined_call_operand.vmem [shape: bf16[32,64], index: 2, kind: input, shape index: {}]   ;;  %s987_s3 = inlined_call_operand.vmem [shape: bf16[32,64], index: 3, kind: input, shape index: {}]   ;;  %s988_s4 = inlined_call_operand.vmem [shape: bf16[64,32], index: 4, kind: input, shape index: {}]   ;;  %s989_s5 = inlined_call_operand.vmem [shape: f32[1,32], index: 5, kind: input, shape index: {}]   ;;  %s990_s6 = inlined_call_operand.vmem [shape: f32[64,4], index: 6, kind: input, shape index: {}]   ;;  %s991_s7 = inlined_call_operand.vmem [shape: f32[4,64], index: 7, kind: input, shape index: {}]   ;;  %s992_s8 = inlined_call_operand.hbm [shape: f32[2,1,32], index: 8, kind: output, shape index: {}]  }
   0x1   :  { %15 = vsyncpa [#allocation3 + $0x1], 0  ;;  %s830_s27 = smov 0   ;;  %s832_s28 = smov 0  }
   0x2   :  { %s834_s29 = smov 0   ;;  %s836_s30 = smov 0  }
   0x3 LB: > { %s851_s9 = sadd.s32 4294967295, %s783_s30   ;;  %s614_s10 = sadd.s32 4294967294, %s783_s30   ;;  %s783_s30 = sphi %s836_s30, %s998_s30   ;;  %s779_s29 = sphi %s834_s29, %s997_s29   ;;  %s775_s28 = sphi %s832_s28, %s996_s28   ;;  %s771_s27 = sphi %s830_s27, %s995_s27  }
   0x4   : > { %s855_s11 = sadd.s32 1, %s783_s30   ;;  %s201_s12 = sadd.s32 1, %s779_s29 }
   0x5   : > { %s198_s13 = ssub.s32 %s783_s30, %s855_s11  ;;  %p211_p0 = scmp.ne.s32.totalorder %s779_s29, %s775_s28 }
   0x6   : > { %p199_p1 = scmp.eq.s32.totalorder %s198_s13, 0  ;;  %p212_p2 = scmp.eq.s32.totalorder %s851_s9, 1 }
   0x7   : > { %p217_p3 = scmp.ne.s32.totalorder %s775_s28, %s771_s27  ;;  %p218_p4 = scmp.eq.s32.totalorder %s614_s10, 1 }
   0x8   : > { %s866_s14 = scalar_select %p199_p1, %s779_s29, %s201_s12  }
   0x9   : > { %p868_p5 = por %p212_p2, %p211_p0  ;;  %p872_p6 = por %p218_p4, %p217_p3 }
   0xa   : > { %p617_p7 = scmp.ge.s32.totalorder %s783_s30, 1  ;;  %p264_p8 = scmp.lt.s32.totalorder %s783_s30, 3 }
   0xc   : > { %p265_p9 = pnand %p617_p7, %p264_p8 }
   0xd   : > { %p296_p10 = scmp.lt.s32.totalorder (!%p265_p9), %s851_s9, 1  ;;  %s294_s21 = sand.u32 (!%p265_p9), 1, %s775_s28  }
   0xe   : > { %268 = sbr.rel (%p265_p9) target bundleno = 625 (0x271), region = 52  ;;  %s555_s24 = scalar_lea.hbm (!%p265_p9), %s992_s8, %s851_s9 }
   0xf   : > { %s559_s13 = sshll.u32 (!%p265_p9), %s555_s24, 4  ;;  %s741_s22 = scalar_lea.hbm (!%p265_p9), %s992_s8, 2  ;;  %s560_s13 = int_to_ptr.hbm [resolvable:$true] %s559_s13 }
  0x10   : > { %s735_s18 = sshra.s32 (!%p265_p9), %s560_s13, 4  ;;  %s736_s18 = int_to_ptr.hbm [resolvable:$true] %s735_s18 }
  0x11   : > { %s737_s19 = scalar_lea.hbm (!%p265_p9), %s736_s18, 1  ;;  %p742_p0 = scmp.lt.s32.totalorder (!%p265_p9), %s736_s18, %s992_s8 }
  0x12   : > { %p738_p11 = scmp.ne.s32.totalorder (!%p265_p9), %s736_s18, %s737_s19  ;;  %p743_p1 = scmp.lt.s32.totalorder (!%p265_p9), %s741_s22, %s737_s19 }
  0x13   : > { %v673_v0 = vld [vmem:[%s985_s1 + $0x8] sm:$0xff]  ;;  %v413_v2 = vld [vmem:[%s990_s6 + $0x38] sm:$0xff]  ;;  %v672_v3 = vld [vmem:[%s985_s1] sm:$0xff]  ;;  %s297_s10 = scalar_select %p296_p10, %s851_s9, 1  ;;  %vm318_vm0 = vcmask 261120   ;;  %vm414_vm1 = vcmask 523264  }
  0x14   : > { %v669_v1 = vld [vmem:[%s986_s2 + $0x8] sm:$0xff]  ;;  %396 = vmatpush.bf16.msra.mxu2 %v673_v0  ;;  %v668_v4 = vld [vmem:[%s986_s2] sm:$0xff]  ;;  %v412_v5 = vld [vmem:[%s990_s6 + $0x30] sm:$0xff]  ;;  %426 = vmatpush.msra.mxu3 %v413_v2  ;;  %vm438_vm2 = vcmask 31744   ;;  %vm462_vm3 = vcmask 1043456   ;;  %vm544_vm4 = vcmask 253952   ;;  %p739_p12 = pnand %p738_p11, %p868_p5  ;;  %p744_p2 = por %p743_p1, %p742_p0 }
  0x15   : > { %328 = vmatpush.bf16.msra.mxu0 %v669_v1  ;;  %s618_s17 = sshll.u32 %s297_s10, 2  ;;  %v411_v11 = vld [vmem:[%s990_s6 + $0x28] sm:$0xff]  ;;  %v410_v12 = vld [vmem:[%s990_s6 + $0x20] sm:$0xff]  ;;  %v409_v13 = vld [vmem:[%s990_s6 + $0x18] sm:$0xff]  ;;  %s295_s10 = scalar_lea.vmem [#allocation2], %s294_s21 }
  0x16   : > { %s299_s20 = scalar_lea.vmem %s984_s0, %s618_s17  ;;  %427 = vmatpush.msra.mxu3 %v412_v5  ;;  %v408_v14 = vld [vmem:[%s990_s6 + $0x10] sm:$0xff]  ;;  %v407_v15 = vld [vmem:[%s990_s6 + $0x8] sm:$0xff]  ;;  %v406_v16 = vld [vmem:[%s990_s6] sm:$0xff]  ;;  %s557_s12 = sshll.u32 %s295_s10, 4  ;;  %s558_s12 = int_to_ptr.vmem [resolvable:$true] %s557_s12 }
  0x17   : > { %v301_v6 = vld [vmem:[%s299_s20] sm:$0xf]  ;;  %v671_v24 = vld [vmem:[%s987_s3 + $0x8] sm:$0xff]  ;;  %v677_v49 = vld [vmem:[%s988_s4 + $0x18] sm:$0xff]  ;;  %s547_s17 = scalar_lea.sflag [#allocation3], %s294_s21  ;;  %p740_p13 = pneg %p739_p12 }
  0x18   : > { %397 = vmatpush.bf16.msra.mxu2 %v672_v3  ;;  %v369_v7 = vunpack.c.l.b16 %v301_v6  ;;  %428 = vmatpush.msra.mxu3 %v411_v11  ;;  %v670_v28 = vld [vmem:[%s987_s3] sm:$0xff]  ;;  %v676_v50 = vld [vmem:[%s988_s4 + $0x10] sm:$0xff]  ;;  %v675_v51 = vld [vmem:[%s988_s4 + $0x8] sm:$0xff] }
  0x19   : > { %329 = vmatpush.bf16.msra.mxu0 %v668_v4  ;;  %357 = vmatpush.bf16.msra.mxu1 %v671_v24  ;;  %v458_v31 = vld [vmem:[%s991_s7] sm:$0xf]  ;;  %p745_p3 = pnand %p744_p2, %p740_p13 }
  0x1a   : > { %v370_v8 = vpack.c.b16 %v369_v7, %v369_v7  ;;  %429 = vmatpush.msra.mxu3 %v410_v12  ;;  %v674_v52 = vld [vmem:[%s988_s4] sm:$0xff] }
  0x1b   : > { %v503_v63 = vld [vmem:[%s989_s5] sm:$0x1] }
  0x1c   : > { %627 = vmatmul.msk.bf16.vlgmr.msra.gmra.mxu0 %vm318_vm0, %v301_v6  ;;  %v372_v9 = vshrl.u32 %v370_v8, 16  ;;  %430 = vmatpush.msra.mxu3 %v409_v13 }
  0x1d   : > { %358 = vmatpush.bf16.msra.mxu1 %v670_v28  ;;  %647 = vmatpush.msk.msrb.mxu0 %vm462_vm3, %v458_v31 }
  0x1e   : > { %v374_v10 = vrot.slane %v372_v9, 3  ;;  %431 = vmatpush.msra.mxu3 %v408_v14 }
  0x20   : > { %645 = vmatmul.msk.bf16.vlgmr.msra.gmra.mxu2 %vm318_vm0, %v374_v10  ;;  %432 = vmatpush.msra.mxu3 %v407_v15 }
  0x21   : > { %636 = vmatmul.msk.bf16.vlgmr.msra.gmra.mxu1 %vm318_vm0, %v301_v6 }
  0x22   : > { %433 = vmatpush.msra.mxu3 %v406_v16  ;;  %535 = vmatpush.bf16.msrb.mxu1 %v677_v49 }
  0x26   : > { %536 = vmatpush.bf16.msrb.mxu1 %v676_v50 }
  0x2a   : > { %537 = vmatpush.bf16.msrb.mxu1 %v675_v51 }
  0x2e   : > { %538 = vmatpush.bf16.msrb.mxu1 %v674_v52 }
  0x99   : > { %v331_v17 = vpop.f32.mrf.mxu0 }
  0x9e   : > { %v360_v47 = vpop.f32.mrf.mxu1 }
  0xa1   : > { %v333_v18 = vpop.f32.mrf.mxu0 }
  0xa3   : > { %v399_v19 = vpop.f32.mrf.mxu2 }
  0xa4   : > { %v403_v20 = vmul.f32 0.25, %v399_v19 }
  0xa6   : > { %v404_v21 = vperm.slane %v403_v20, 0  ;;  %v362_v48 = vpop.f32.mrf.mxu1 }
  0xa8   : > { %v405_v22 = vmul.f32 %v404_v21, %v331_v17 }
  0xaa   : > { %646 = vmatmul.msk.f32.vlgmr.msra.gmra.mxu3 %vm414_vm1, %v405_v22 }
  0xab   : > { %v401_v23 = vpop.f32.mrf.mxu2 }
 0x12d   : > { %v435_v25 = vpop.f32.mrf.mxu3 }
 0x12e   : > { %v439_v26 = vsel %vm438_vm2, %v435_v25, -inf }
 0x12f   : > { %v440_v27 = vrot.slane %v439_v26, 4 }
 0x131   : > { %v441_v29 = vmax.f32 %v439_v26, %v440_v27 }
 0x133   : > { %v442_v30 = vrot.slane %v441_v29, 2 }
 0x135   : > { %v443_v32 = vmax.f32 %v441_v29, %v442_v30 }
 0x137   : > { %v444_v33 = vrot.slane %v443_v32, 1 }
 0x139   : > { %v445_v34 = vmax.f32 %v443_v32, %v444_v33 }
 0x13b   : > { %v446_v35 = vsub.f32 %v435_v25, %v445_v34 }
 0x13d   : > { %v447_v36 = vmul.f32 1.442695, %v446_v35 }
 0x13f   : > { %717 = vpow2.f32 %v447_v36 }
 0x145   : > { %v718_v37 = vpop.eup %717 }
 0x146   : > { %v449_v38 = vsel %vm438_vm2, %v718_v37, 0.0 }
 0x147   : > { %v450_v39 = vrot.slane %v449_v38, 4 }
 0x149   : > { %v451_v40 = vadd.f32 %v450_v39, %v449_v38 }
 0x14b   : > { %v452_v41 = vrot.slane %v451_v40, 2 }
 0x14d   : > { %v453_v42 = vadd.f32 %v452_v41, %v451_v40 }
 0x14f   : > { %v454_v43 = vrot.slane %v453_v42, 1 }
 0x151   : > { %v455_v44 = vadd.f32 %v454_v43, %v453_v42 }
 0x153   : > { %719 = vrcp.f32 %v455_v44 }
 0x159   : > { %v720_v45 = vpop.eup %719 }
 0x15a   : > { %v457_v46 = vmul.f32 %v720_v45, %v718_v37 }
 0x15c   : > { %648 = vmatmul.msk.f32.vlgmr.msrb.gmra.mxu0 %vm438_vm2, %v457_v46 }
 0x1d9   : > { %v483_v53 = vpop.f32.mrf.mxu0 }
 0x1da   : > { %v486_v54 = vmul.f32 %v483_v53, %v360_v47 }
 0x1dc   : > { %v487_v55 = vsel %vm414_vm1, %v486_v54, 0.0 }
 0x1dd   : > { %v488_v56 = vrot.slane %v487_v55, 4 }
 0x1df   : > { %v489_v57 = vadd.f32 %v488_v56, %v487_v55 }
 0x1e1   : > { %v490_v58 = vrot.slane %v489_v57, 2 }
 0x1e3   : > { %v491_v59 = vadd.f32 %v490_v58, %v489_v57 }
 0x1e5   : > { %v492_v60 = vrot.slane %v491_v59, 1 }
 0x1e7   : > { %v493_v61 = vadd.f32 %v492_v60, %v491_v59 }
 0x1e9   : > { %v494_v62 = vpack.c.bf16 %v493_v61, %v493_v61 }
 0x1eb   : > { %665 = vmatmul.msk.bf16.vlgmr.msrb.gmra.mxu1 %vm414_vm1, %v494_v62 }
 0x268   : > { %v540_v0 = vpop.f32.mrf.mxu1 }
 0x269   : > { %v541_v1 = vadd.f32 %v540_v0, %v503_v63 }
 0x26b   : > { %545 = vst.msk [vmem:[%s295_s10] sm:$0x1] %vm544_vm4, %v541_v1 }
 0x26c   : > { %748 = shalt.err (!%p745_p3)
}
 0x26d   : > { %678 = dma.vmem_to_hbm [thread:$0]  (%p868_p5), %s558_s12, 16, %s560_s13, %s547_s17  }
 0x270   : > { %v542_v2 = vpop.f32.mrf.mxu1 }
 0x271 PF: > { %p684_p4 = scmp.ge.s32.totalorder %s783_s30, 2  ;;  %s571_s21 = sand.u32 1, %s771_s27  }
 0x272   : > { %s572_s25 = scalar_lea.sflag [#allocation3], %s571_s21 }
 0x273   : > { %p681_p7 = pnand %p684_p4, %p872_p6 }
 0x275   : > { %p682_p8 = pneg %p681_p7 }
 0x277   : > { %766 = dma.done.wait (%p682_p8), %s572_s25, 16  }
 0x278   : > { %768 = vsyncadd (%p682_p8), %s572_s25, 4294967280  ;;  %p18_p9 = scmp.ge.s32.totalorder %s855_s11, 4   ;;  %s995_s27 = smov %s775_s28 }
 0x279   : > { %s996_s28 = smov %s779_s29  ;;  %s997_s29 = smov %s866_s14 }
 0x27a   : > { %s998_s30 = smov %s855_s11  ;;  %20 = sbr.rel (!%p18_p9) target bundleno = 3 (0x3), region = 87 }
 0x27f   :  { %577 = vsyncpa [#allocation3], 1 }
 0x280   :  { %579 = vsyncpa [#allocation3 + $0x1], 1 }

</bundles_post_ra>
